<compile_context>
chip_gen: v7x
topology: tpu7x:2x2x1
jax: 0.10.0
libtpu: 0.0.40
codegen_flags: <defaults>
</compile_context>

<pallas_src>
import functools

import jax
import jax.numpy as jnp
from jax.experimental import pallas as pl
from jax.experimental.pallas import tpu as pltpu

_LANES = 128


def _dice_kernel(p_ref, t_ref, inter_ref, psum_ref, tsum_ref, *,
                 s_orig, tile_r, padded):
    """Blocks: p_ref/t_ref (C, TILE_R, 128); outputs (C, 128) per batch item."""
    si = pl.program_id(1)

    @pl.when(si == 0)
    def _():
        inter_ref[...] = jnp.zeros_like(inter_ref)
        psum_ref[...] = jnp.zeros_like(psum_ref)
        tsum_ref[...] = jnp.zeros_like(tsum_ref)

    logits = p_ref[...].astype(jnp.float32)   # (C, TILE_R, 128)
    tgt = t_ref[...].astype(jnp.float32)      # (C, TILE_R, 128)

    # Softmax across the channel (leading slab) axis: elementwise across C
    # slabs, pure VPU/EUP, no cross-lane work.
    m = jnp.max(logits, axis=0, keepdims=True)            # (1, TILE_R, 128)
    e = jnp.exp(logits - m)                                # (C, TILE_R, 128)
    denom = jnp.sum(e, axis=0, keepdims=True)              # (1, TILE_R, 128)
    sm = e * pl.reciprocal(denom, approx=False)            # (C, TILE_R, 128)

    if padded:
        # Zero the softmax contribution of padded voxels (targets are already
        # zero-padded, so inter/tsum need no extra masking).
        row = jax.lax.broadcasted_iota(jnp.int32, (tile_r, _LANES), 0)
        lane = jax.lax.broadcasted_iota(jnp.int32, (tile_r, _LANES), 1)
        gidx = (si * tile_r + row) * _LANES + lane
        valid = gidx < s_orig
        sm = jnp.where(valid[None, :, :], sm, 0.0)

    # Fold the tile over its sublane axis -> small (C, 128) partials, then
    # accumulate into the per-batch output blocks (resident across the si axis).
    inter_ref[...] += jnp.sum(sm * tgt, axis=1)
    psum_ref[...] += jnp.sum(sm, axis=1)
    tsum_ref[...] += jnp.sum(tgt, axis=1)


def dice_coef_multilabel_loss_3d(predict, target, num_labels=2,
                                 channel="channel_first", *,
                                 tile_rows=None,
                                 vmem_budget_bytes=32 * 1024 * 1024):
    """predict, target: (N, C, D, H, W). Returns scalar dice loss."""
    assert channel == "channel_first", "only channel_first is implemented"
    assert predict.shape == target.shape
    n, c = predict.shape[0], predict.shape[1]
    num_labels = int(num_labels)
    assert 1 <= num_labels <= c

    s = 1
    for d in predict.shape[2:]:
        s *= int(d)

    # Rows of 128 lanes; pad rows up to a multiple of the row-tile.
    r = -(-s // _LANES)
    if tile_rows is None:
        # 2 inputs x 2 pipeline buffers of (c, tile_r, 128) f32 within budget.
        max_rows = vmem_budget_bytes // (4 * c * _LANES * 4)
        max_rows = max(8, (max_rows // 8) * 8)
        tile_r = min(max_rows, ((r + 7) // 8) * 8)
    else:
        tile_r = int(tile_rows)
        assert tile_r % 8 == 0, "tile_rows must be a multiple of 8"
    r_pad = -(-r // tile_r) * tile_r
    s_pad = r_pad * _LANES
    num_si = r_pad // tile_r
    padded = s_pad != s

    # Free reshape (no transpose); pad only if spatial size is awkward.
    p2 = predict.reshape(n, c, s)
    t2 = target.reshape(n, c, s)
    if padded:
        pad_cfg = ((0, 0), (0, 0), (0, s_pad - s))
        p2 = jnp.pad(p2, pad_cfg)
        t2 = jnp.pad(t2, pad_cfg)
    p4 = p2.reshape(n, c, r_pad, _LANES)
    t4 = t2.reshape(n, c, r_pad, _LANES)

    kernel = functools.partial(_dice_kernel, s_orig=s, tile_r=tile_r,
                               padded=padded)

    block_bytes = c * tile_r * _LANES * 4
    needed = 4 * block_bytes + 6 * c * _LANES * 4 + (2 << 20)
    # Floor at the default scoped limit, cap with headroom for v7x (64 MiB VMEM).
    vmem_limit = int(min(max(needed, 32 << 20), 48 << 20))

    part_shape = jax.ShapeDtypeStruct((n, c, _LANES), jnp.float32)
    part_spec = pl.BlockSpec((None, c, _LANES), lambda ni, si: (ni, 0, 0))
    in_spec = pl.BlockSpec((None, c, tile_r, _LANES),
                           lambda ni, si: (ni, 0, si, 0))

    inter, psum, tsum = pl.pallas_call(
        kernel,
        out_shape=(part_shape, part_shape, part_shape),
        grid_spec=pltpu.PrefetchScalarGridSpec(
            num_scalar_prefetch=0,
            grid=(n, num_si),
            in_specs=[in_spec, in_spec],
            out_specs=(part_spec, part_spec, part_spec),
        ),
        compiler_params=pltpu.CompilerParams(
            # Batch axis is independent (per-batch output blocks) -> megacore
            # shardable on v7x; spatial axis is a sequential reduction.
            dimension_semantics=("parallel", "arbitrary"),
            vmem_limit_bytes=vmem_limit,
        ),
    )(p4, t4)

    # Tiny epilogue in plain JAX: finish the reduction and the dice formula.
    inter_c = jnp.sum(inter, axis=(0, 2))   # (C,)
    p_c = jnp.sum(psum, axis=(0, 2))        # (C,)
    t_c = jnp.sum(tsum, axis=(0, 2))        # (C,)
    score = (2.0 * inter_c + 1.0) / (p_c + t_c + 1.0)
    loss_per_channel = 1.0 - score
    return jnp.sum(loss_per_channel[:num_labels]) / num_labels


def dice_loss_ref(predict, target, num_labels=2):
    """Pure-JAX reference mirroring the PyTorch forward (channel_first)."""
    p = jax.nn.softmax(predict, axis=1)
    dice = 0.0
    for idx in range(num_labels):
        pc = p[:, idx].reshape(-1)
        tc = target[:, idx].reshape(-1).astype(jnp.float32)
        inter = jnp.sum(pc * tc)
        score = (2.0 * inter + 1.0) / (jnp.sum(pc) + jnp.sum(tc) + 1.0)
        dice = dice + (1.0 - score)
    return dice / num_labels


if __name__ == "__main__":
    key = jax.random.PRNGKey(0)
    k1, k2, k3, k4 = jax.random.split(key, 4)

    # Case 1: awkward spatial size (S = 8*14*12 = 1344, not a multiple of 128)
    # with a small forced row-tile -> exercises padding/masking and multi-step
    # spatial accumulation, plus num_labels < C slicing.
    N, C, D, H, W = 2, 4, 8, 14, 12
    NUM_LABELS = 3
    predict = jax.random.normal(k1, (N, C, D, H, W), dtype=jnp.float32)
    labels = jax.random.randint(k2, (N, D, H, W), 0, C)
    target = jax.nn.one_hot(labels, C, axis=1, dtype=jnp.float32)

    out1 = dice_coef_multilabel_loss_3d(predict, target, num_labels=NUM_LABELS,
                                        tile_rows=8)
    out1 = jax.block_until_ready(out1)
    ref1 = dice_loss_ref(predict, target, num_labels=NUM_LABELS)
    assert jnp.allclose(out1, ref1, atol=1e-5, rtol=1e-5), (out1, ref1)

    # Case 2: 128-aligned spatial size (S = 8*16*16 = 2048) with automatic
    # tile sizing -> exercises the unpadded, single-spatial-step fast path.
    N2, C2 = 2, 2
    predict2 = jax.random.normal(k3, (N2, C2, 8, 16, 16), dtype=jnp.float32)
    labels2 = jax.random.randint(k4, (N2, 8, 16, 16), 0, C2)
    target2 = jax.nn.one_hot(labels2, C2, axis=1, dtype=jnp.float32)

    out2 = dice_coef_multilabel_loss_3d(predict2, target2, num_labels=2)
    out2 = jax.block_until_ready(out2)
    ref2 = dice_loss_ref(predict2, target2, num_labels=2)
    assert jnp.allclose(out2, ref2, atol=1e-5, rtol=1e-5), (out2, ref2)

    print("KERNEL_OK")
</pallas_src>

<mosaic_0001>
module attributes {stable_mosaic.version = 11 : i64} {
  func.func @_dice_kernel(%arg0: i32, %arg1: i32, %arg2: memref<1x4x8x128xf32, #tpu.memory_space<vmem>>, %arg3: memref<1x4x8x128xf32, #tpu.memory_space<vmem>>, %arg4: memref<1x4x128xf32, #tpu.memory_space<vmem>>, %arg5: memref<1x4x128xf32, #tpu.memory_space<vmem>>, %arg6: memref<1x4x128xf32, #tpu.memory_space<vmem>>) attributes {dimension_semantics = [#tpu.dimension_semantics<parallel>, #tpu.dimension_semantics<arbitrary>], iteration_bounds = array<i64: 2, 2>, scalar_prefetch = 0 : i64, scratch_operands = 0 : i64, tpu.core_type = #tpu.core_type<tc>, window_params = [{transform_indices = @transform_0, window_bounds = array<i64: 1, 4, 8, 128>}, {transform_indices = @transform_1, window_bounds = array<i64: 1, 4, 8, 128>}, {transform_indices = @transform_2, window_bounds = array<i64: 1, 4, 128>}, {transform_indices = @transform_3, window_bounds = array<i64: 1, 4, 128>}, {transform_indices = @transform_4, window_bounds = array<i64: 1, 4, 128>}]} {
    %c0_i32 = arith.constant 0 : i32
    %0 = arith.cmpi eq, %arg1, %c0_i32 : i32
    %1 = arith.extui %0 : i1 to i32
    %c0_i32_0 = arith.constant 0 : i32
    %2 = arith.cmpi ne, %1, %c0_i32_0 : i32
    scf.if %2 {
      %cst_31 = arith.constant 0.000000e+00 : f32
      %54 = vector.broadcast %cst_31 : f32 to vector<4x128xf32>
      %c0_32 = arith.constant 0 : index
      %c0_33 = arith.constant 0 : index
      %c0_34 = arith.constant 0 : index
      %55 = vector.load %arg4[%c0_32, %c0_33, %c0_34] : memref<1x4x128xf32, #tpu.memory_space<vmem>>, vector<1x4x128xf32>
      %56 = vector.shape_cast %55 : vector<1x4x128xf32> to vector<4x128xf32>
      %57 = vector.shape_cast %54 : vector<4x128xf32> to vector<1x4x128xf32>
      tpu.vector_store %arg4[%c0_32, %c0_33, %c0_34], %57 {strides = array<i32>} : memref<1x4x128xf32, #tpu.memory_space<vmem>>, vector<1x4x128xf32>,
      %cst_35 = arith.constant 0.000000e+00 : f32
      %58 = vector.broadcast %cst_35 : f32 to vector<4x128xf32>
      %c0_36 = arith.constant 0 : index
      %c0_37 = arith.constant 0 : index
      %c0_38 = arith.constant 0 : index
      %59 = vector.load %arg5[%c0_36, %c0_37, %c0_38] : memref<1x4x128xf32, #tpu.memory_space<vmem>>, vector<1x4x128xf32>
      %60 = vector.shape_cast %59 : vector<1x4x128xf32> to vector<4x128xf32>
      %61 = vector.shape_cast %58 : vector<4x128xf32> to vector<1x4x128xf32>
      tpu.vector_store %arg5[%c0_36, %c0_37, %c0_38], %61 {strides = array<i32>} : memref<1x4x128xf32, #tpu.memory_space<vmem>>, vector<1x4x128xf32>,
      %cst_39 = arith.constant 0.000000e+00 : f32
      %62 = vector.broadcast %cst_39 : f32 to vector<4x128xf32>
      %c0_40 = arith.constant 0 : index
      %c0_41 = arith.constant 0 : index
      %c0_42 = arith.constant 0 : index
      %63 = vector.load %arg6[%c0_40, %c0_41, %c0_42] : memref<1x4x128xf32, #tpu.memory_space<vmem>>, vector<1x4x128xf32>
      %64 = vector.shape_cast %63 : vector<1x4x128xf32> to vector<4x128xf32>
      %65 = vector.shape_cast %62 : vector<4x128xf32> to vector<1x4x128xf32>
      tpu.vector_store %arg6[%c0_40, %c0_41, %c0_42], %65 {strides = array<i32>} : memref<1x4x128xf32, #tpu.memory_space<vmem>>, vector<1x4x128xf32>,
    } else {
    }
    %c0 = arith.constant 0 : index
    %c0_1 = arith.constant 0 : index
    %c0_2 = arith.constant 0 : index
    %c0_3 = arith.constant 0 : index
    %3 = vector.load %arg2[%c0, %c0_1, %c0_2, %c0_3] : memref<1x4x8x128xf32, #tpu.memory_space<vmem>>, vector<1x4x8x128xf32>
    %4 = vector.shape_cast %3 : vector<1x4x8x128xf32> to vector<4x8x128xf32>
    %c0_4 = arith.constant 0 : index
    %c0_5 = arith.constant 0 : index
    %c0_6 = arith.constant 0 : index
    %c0_7 = arith.constant 0 : index
    %5 = vector.load %arg3[%c0_4, %c0_5, %c0_6, %c0_7] : memref<1x4x8x128xf32, #tpu.memory_space<vmem>>, vector<1x4x8x128xf32>
    %6 = vector.shape_cast %5 : vector<1x4x8x128xf32> to vector<4x8x128xf32>
    %cst = arith.constant dense<0xFF800000> : vector<8x128xf32>
    %7 = vector.multi_reduction <maximumf>, %4, %cst [0] : vector<4x8x128xf32> to vector<8x128xf32>
    %8 = vector.shape_cast %7 : vector<8x128xf32> to vector<1x8x128xf32>
    %9 = vector.broadcast %8 : vector<1x8x128xf32> to vector<4x8x128xf32>
    %10 = arith.subf %4, %9 : vector<4x8x128xf32>
    %11 = math.exp %10 : vector<4x8x128xf32>
    %cst_8 = arith.constant dense<0.000000e+00> : vector<8x128xf32>
    %12 = vector.multi_reduction <add>, %11, %cst_8 [0] : vector<4x8x128xf32> to vector<8x128xf32>
    %13 = vector.shape_cast %12 : vector<8x128xf32> to vector<1x8x128xf32>
    %14 = tpu.reciprocal %13 : vector<1x8x128xf32> -> vector<1x8x128xf32>
    %15 = vector.broadcast %14 : vector<1x8x128xf32> to vector<4x8x128xf32>
    %16 = arith.mulf %11, %15 : vector<4x8x128xf32>
    %17 = tpu.iota {dimensions = array<i32: 0>} : vector<8x128xi32>
    %18 = tpu.iota {dimensions = array<i32: 1>} : vector<8x128xi32>
    %c8_i32 = arith.constant 8 : i32
    %19 = arith.muli %arg1, %c8_i32 : i32
    %20 = vector.broadcast %19 : i32 to vector<8x128xi32>
    %21 = arith.addi %20, %17 : vector<8x128xi32>
    %c128_i32 = arith.constant 128 : i32
    %22 = vector.broadcast %c128_i32 : i32 to vector<8x128xi32>
    %23 = arith.muli %21, %22 : vector<8x128xi32>
    %24 = arith.addi %23, %18 : vector<8x128xi32>
    %c1344_i32 = arith.constant 1344 : i32
    %25 = vector.broadcast %c1344_i32 : i32 to vector<8x128xi32>
    %26 = arith.cmpi slt, %24, %25 : vector<8x128xi32>
    %27 = vector.shape_cast %26 : vector<8x128xi1> to vector<1x8x128xi1>
    %cst_9 = arith.constant 0.000000e+00 : f32
    %28 = vector.shape_cast %27 : vector<1x8x128xi1> to vector<1x8x128xi1>
    %29 = vector.broadcast %28 : vector<1x8x128xi1> to vector<4x8x128xi1>
    %30 = vector.broadcast %cst_9 : f32 to vector<4x8x128xf32>
    %31 = arith.select %29, %16, %30 : vector<4x8x128xi1>, vector<4x8x128xf32>
    %c0_10 = arith.constant 0 : index
    %c0_11 = arith.constant 0 : index
    %c0_12 = arith.constant 0 : index
    %32 = vector.load %arg4[%c0_10, %c0_11, %c0_12] : memref<1x4x128xf32, #tpu.memory_space<vmem>>, vector<1x4x128xf32>
    %33 = vector.shape_cast %32 : vector<1x4x128xf32> to vector<4x128xf32>
    %34 = arith.mulf %31, %6 : vector<4x8x128xf32>
    %cst_13 = arith.constant dense<0.000000e+00> : vector<4x128xf32>
    %35 = vector.multi_reduction <add>, %34, %cst_13 [1] : vector<4x8x128xf32> to vector<4x128xf32>
    %36 = arith.addf %33, %35 : vector<4x128xf32>
    %c0_14 = arith.constant 0 : index
    %c0_15 = arith.constant 0 : index
    %c0_16 = arith.constant 0 : index
    %37 = vector.load %arg4[%c0_14, %c0_15, %c0_16] : memref<1x4x128xf32, #tpu.memory_space<vmem>>, vector<1x4x128xf32>
    %38 = vector.shape_cast %37 : vector<1x4x128xf32> to vector<4x128xf32>
    %39 = vector.shape_cast %36 : vector<4x128xf32> to vector<1x4x128xf32>
    tpu.vector_store %arg4[%c0_14, %c0_15, %c0_16], %39 {strides = array<i32>} : memref<1x4x128xf32, #tpu.memory_space<vmem>>, vector<1x4x128xf32>,
    %c0_17 = arith.constant 0 : index
    %c0_18 = arith.constant 0 : index
    %c0_19 = arith.constant 0 : index
    %40 = vector.load %arg5[%c0_17, %c0_18, %c0_19] : memref<1x4x128xf32, #tpu.memory_space<vmem>>, vector<1x4x128xf32>
    %41 = vector.shape_cast %40 : vector<1x4x128xf32> to vector<4x128xf32>
    %cst_20 = arith.constant dense<0.000000e+00> : vector<4x128xf32>
    %42 = vector.multi_reduction <add>, %31, %cst_20 [1] : vector<4x8x128xf32> to vector<4x128xf32>
    %43 = arith.addf %41, %42 : vector<4x128xf32>
    %c0_21 = arith.constant 0 : index
    %c0_22 = arith.constant 0 : index
    %c0_23 = arith.constant 0 : index
    %44 = vector.load %arg5[%c0_21, %c0_22, %c0_23] : memref<1x4x128xf32, #tpu.memory_space<vmem>>, vector<1x4x128xf32>
    %45 = vector.shape_cast %44 : vector<1x4x128xf32> to vector<4x128xf32>
    %46 = vector.shape_cast %43 : vector<4x128xf32> to vector<1x4x128xf32>
    tpu.vector_store %arg5[%c0_21, %c0_22, %c0_23], %46 {strides = array<i32>} : memref<1x4x128xf32, #tpu.memory_space<vmem>>, vector<1x4x128xf32>,
    %c0_24 = arith.constant 0 : index
    %c0_25 = arith.constant 0 : index
    %c0_26 = arith.constant 0 : index
    %47 = vector.load %arg6[%c0_24, %c0_25, %c0_26] : memref<1x4x128xf32, #tpu.memory_space<vmem>>, vector<1x4x128xf32>
    %48 = vector.shape_cast %47 : vector<1x4x128xf32> to vector<4x128xf32>
    %cst_27 = arith.constant dense<0.000000e+00> : vector<4x128xf32>
    %49 = vector.multi_reduction <add>, %6, %cst_27 [1] : vector<4x8x128xf32> to vector<4x128xf32>
    %50 = arith.addf %48, %49 : vector<4x128xf32>
    %c0_28 = arith.constant 0 : index
    %c0_29 = arith.constant 0 : index
    %c0_30 = arith.constant 0 : index
    %51 = vector.load %arg6[%c0_28, %c0_29, %c0_30] : memref<1x4x128xf32, #tpu.memory_space<vmem>>, vector<1x4x128xf32>
    %52 = vector.shape_cast %51 : vector<1x4x128xf32> to vector<4x128xf32>
    %53 = vector.shape_cast %50 : vector<4x128xf32> to vector<1x4x128xf32>
    tpu.vector_store %arg6[%c0_28, %c0_29, %c0_30], %53 {strides = array<i32>} : memref<1x4x128xf32, #tpu.memory_space<vmem>>, vector<1x4x128xf32>,
    return
  }
  func.func @transform_0(%arg0: i32, %arg1: i32) -> (i32, i32, i32, i32) {
    %c0_i32 = arith.constant 0 : i32
    %c0_i32_0 = arith.constant 0 : i32
    %c0_i32_1 = arith.constant 0 : i32
    return %arg0, %c0_i32, %arg1, %c0_i32_0 : i32, i32, i32, i32
  }
  func.func @transform_1(%arg0: i32, %arg1: i32) -> (i32, i32, i32, i32) {
    %c0_i32 = arith.constant 0 : i32
    %c0_i32_0 = arith.constant 0 : i32
    %c0_i32_1 = arith.constant 0 : i32
    return %arg0, %c0_i32, %arg1, %c0_i32_0 : i32, i32, i32, i32
  }
  func.func @transform_2(%arg0: i32, %arg1: i32) -> (i32, i32, i32) {
    %c0_i32 = arith.constant 0 : i32
    %c0_i32_0 = arith.constant 0 : i32
    %c0_i32_1 = arith.constant 0 : i32
    return %arg0, %c0_i32, %c0_i32_0 : i32, i32, i32
  }
  func.func @transform_3(%arg0: i32, %arg1: i32) -> (i32, i32, i32) {
    %c0_i32 = arith.constant 0 : i32
    %c0_i32_0 = arith.constant 0 : i32
    %c0_i32_1 = arith.constant 0 : i32
    return %arg0, %c0_i32, %c0_i32_0 : i32, i32, i32
  }
  func.func @transform_4(%arg0: i32, %arg1: i32) -> (i32, i32, i32) {
    %c0_i32 = arith.constant 0 : i32
    %c0_i32_0 = arith.constant 0 : i32
    %c0_i32_1 = arith.constant 0 : i32
    return %arg0, %c0_i32, %c0_i32_0 : i32, i32, i32
  }
}

</mosaic_0001>

<bundles_post_ra>
// kernel: tpu_custom_call.1
= control target key start
LH: loop header
LB: loop body
LE: loop exit
PB: predicated region body
PF: predicated region fallthrough
CT: control target
= control target key end

     0   :  { %s1518_s0 = inlined_call_operand.hbm [shape: f32[2,4,16,128], index: 0, kind: input, shape index: {}]   ;;  %s1519_s1 = inlined_call_operand.hbm [shape: f32[2,4,16,128], index: 1, kind: input, shape index: {}]   ;;  %s1520_s2 = inlined_call_operand.hbm [shape: f32[2,4,128], index: 2, kind: output, shape index: {0}]   ;;  %s1521_s3 = inlined_call_operand.hbm [shape: f32[2,4,128], index: 3, kind: output, shape index: {1}]   ;;  %s1522_s4 = inlined_call_operand.hbm [shape: f32[2,4,128], index: 4, kind: output, shape index: {2}]  }
   0x1   :  { %1534 = sst [smem:[#allocation23_spill]] %s1518_s0 }
   0x2   :  { %10 = vsyncpa [#allocation3], 0 }
   0x3   :  { %12 = vsyncpa [#allocation3 + $0x1], 0 }
   0x4   :  { %13 = vsyncpa [#allocation6], 0 }
   0x5   :  { %15 = vsyncpa [#allocation6 + $0x1], 0 }
   0x6   :  { %16 = vsyncpa [#allocation4], 0 }
   0x7   :  { %18 = vsyncpa [#allocation4 + $0x1], 0 }
   0x8   :  { %19 = vsyncpa [#allocation9], 0 }
   0x9   :  { %21 = vsyncpa [#allocation9 + $0x1], 0  ;;  %s1116_s15 = smov 0   ;;  %s1118_s16 = smov 0  }
   0xa   :  { %s1120_s17 = smov 0   ;;  %s1122_s18 = smov 0  }
   0xb   :  { %s1124_s19 = smov 0   ;;  %s1126_s20 = smov 0  }
   0xc   :  { %s1128_s21 = smov 0   ;;  %s1130_s22 = smov 0  }
   0xd   :  { %s1132_s23 = smov 0   ;;  %s1134_s24 = smov 0  }
   0xe   :  { %s1136_s25 = smov 0  }
   0xf LB: > { %1535 = sst [smem:[#allocation15_spill]] %s1048_s17  ;;  %s1170_s26 = sadd.s32 4294967295, %s1080_s25   ;;  %s1080_s25 = sphi %s1136_s25, %s27_s25   ;;  %s1076_s24 = sphi %s1134_s24, %s1564_s24   ;;  %s1072_s23 = sphi %s1132_s23, %s1563_s23   ;;  %s1068_s22 = sphi %s1130_s22, %s1569_s22   ;;  %s1064_s21 = sphi %s1128_s21, %s1561_s21   ;;  %s1060_s20 = sphi %s1126_s20, %s1560_s20   ;;  %s1056_s19 = sphi %s1124_s19, %s1568_s19   ;;  %s1052_s18 = sphi %s1122_s18, %s1567_s18   ;;  %s1048_s17 = sphi %s1120_s17, %s1558_s17   ;;  %s1044_s16 = sphi %s1118_s16, %s1566_s16   ;;  %s1040_s15 = sphi %s1116_s15, %s1565_s15  }
  0x10   : > { %1536 = sst [smem:[#allocation16_spill]] %s1060_s20  ;;  %s1523_s27 = sadd.s32 4294967294, %s1080_s25  }
  0x11   : > { %1537 = sst [smem:[#allocation17_spill]] %s1072_s23  ;;  %s36_s28 = sadd.s32 1, %s1072_s23 }
  0x12   : > { %1538 = sst [smem:[#allocation18_spill]] %s1076_s24  ;;  %s39_s29 = sadd.s32 1, %s1076_s24 }
  0x13   : > { %p37_p0 = scmp.ge.s32.totalorder %s36_s28, 2  ;;  %s48_s30 = sadd.s32 1, %s1060_s20 }
  0x14   : > { %p55_p1 = scmp.ne.s32.totalorder %s1060_s20, %s1056_s19  ;;  %p56_p2 = scmp.eq.s32.totalorder %s1080_s25, 0 }
  0x15   : > { %s1571_s28 = smov (%p37_p0, %s36_s28), 0  ;;  %s1573_s29 = smov (!%p37_p0, %s39_s29), %s1076_s24 }
  0x16   : > { %1539 = sst [smem:[#allocation19_spill]] %s1571_s28  ;;  %s44_s5 = ssub.s32 %s1072_s23, %s1571_s28 }
  0x17   : > { %p1184_p3 = por %p56_p2, %p55_p1  ;;  %p41_p4 = scmp.ge.s32.totalorder %s1573_s29, 2 }
  0x18   : > { %p61_p5 = scmp.ne.s32.totalorder %s1056_s19, %s1052_s18  ;;  %p62_p6 = scmp.eq.s32.totalorder %s1170_s26, 0 }
  0x19   : > { %s102_s7 = sadd.s32 1, %s1048_s17  ;;  %s1575_s29 = smov (%p41_p4, %s1573_s29), 0 }
  0x1a   : > { %1541 = sst [smem:[#allocation20_spill]] %s1575_s29  ;;  %p1193_p7 = por %p62_p6, %p61_p5 }
  0x1b   : > { %p112_p8 = scmp.ne.s32.totalorder %s1048_s17, %s1044_s16  ;;  %s43_s9 = ssub.s32 %s1076_s24, %s1575_s29 }
  0x1c   : > { %s1542_s8 = scalar_select %p1193_p7, 1, 0 }
  0x1d   : > { %p113_p9 = scmp.eq.s32.totalorder %s1170_s26, 3  ;;  %s45_s10 = sor.u32 %s44_s5, %s43_s9 }
  0x1e   : > { %p100_p10 = scmp.eq.s32.totalorder %s43_s9, 0  ;;  %p46_p11 = scmp.eq.s32.totalorder %s45_s10, 0 }
  0x1f   : > { %p1202_p12 = por %p113_p9, %p112_p8  ;;  %p118_p13 = scmp.ne.s32.totalorder %s1044_s16, %s1040_s15 }
  0x20   : > { %s1207_s12 = scalar_select %p100_p10, %s1048_s17, %s102_s7  }
  0x21   : > { %s1543_s11 = scalar_select %p1202_p12, 1, 0 }
  0x22   : > { %1544 = sst [smem:[#allocation21_spill]] %s1207_s12  ;;  %p119_p0 = scmp.eq.s32.totalorder %s1523_s27, 3 }
  0x23   : > { %s1210_s13 = scalar_select %p46_p11, %s1060_s20, %s48_s30  }
  0x24   : > { %p730_p1 = scmp.lt.s32.totalorder %s1080_s25, 4  ;;  %p1217_p2 = por %p119_p0, %p118_p13 }
  0x25   : > { %1545 = sst [smem:[#allocation22_spill]] %s1210_s13  ;;  %s1222_s18 = sand.u32 1, %s1060_s20  }
  0x26   : > { %s1546_s14 = scalar_select %p1217_p2, 1, 0 }
  0x27   : > { %s1526_s5 = sshll.u32 %s1222_s18, 5  ;;  %s682_s9 = sshll.u32 %s1076_s24, 3 }
  0x28   : > { %s1227_s10 = sadd.s32 %s1072_s23, %s682_s9  ;;  %s195_s30 = scalar_lea.vmem [#allocation2], %s1526_s5 }
  0x29   : > { %s203_s7 = sshll.u32 %s195_s30, 4  ;;  %s1527_s27 = sshll.u32 %s1227_s10, 7  ;;  %s1232_s7 = int_to_ptr.vmem [resolvable:$true] %s203_s7 }
  0x2a   : > { %s1547_s0 = sld [smem:[#allocation23_spill]]  ;;  %p1243_p4 = pnand %p730_p1, %p1184_p3 }
  0x2c   : > { %p836_p6 = pneg %p1243_p4 }
  0x30   : > { %s1239_s13 = scalar_lea.hbm %s1547_s0, %s1527_s27  ;;  %s839_s6 = scalar_lea.hbm %s1547_s0, 2048 }
  0x31   : > { %s834_s5 = scalar_lea.hbm %s1239_s13, 512  ;;  %p840_p3 = scmp.lt.u32.totalorder %s1239_s13, %s1547_s0 }
  0x32   : > { %p835_p5 = scmp.ne.s32.totalorder %s1239_s13, %s834_s5  ;;  %p841_p10 = scmp.lt.u32.totalorder %s839_s6, %s834_s5 }
  0x33   : > { %p843_p13 = scmp.lt.u32.totalorder %s834_s5, %s1239_s13 }
  0x34   : > { %p837_p8 = pnand %p836_p6, %p835_p5  ;;  %p842_p11 = por %p841_p10, %p840_p3 }
  0x36   : > { %p838_p9 = pneg %p837_p8  ;;  %p844_p0 = por %p843_p13, %p842_p11 }
  0x38   : > { %p845_p1 = pnand %p844_p0, %p838_p9 }
  0x3a   : > { %848 = shalt.err (!%p845_p1)
}
  0x3b   : > { %s849_s30 = scalar_lea.vmem %s1232_s7, 512  ;;  %s1082_s28 = smov [#allocation2]  }
  0x3c   : > { %p850_p5 = scmp.ne.s32.totalorder %s1232_s7, %s849_s30  ;;  %s854_s29 = sshll.u32 %s1082_s28, 4  ;;  %s855_s29 = int_to_ptr.vmem [resolvable:$false] %s854_s29 }
  0x3d   : > { %s856_s24 = scalar_lea.vmem %s855_s29, 1024  ;;  %p857_p12 = scmp.lt.s32.totalorder %s1232_s7, %s855_s29 }
  0x3e   : > { %p852_p8 = pnand %p850_p5, %p836_p6  ;;  %p858_p3 = scmp.lt.s32.totalorder %s856_s24, %s849_s30 }
  0x40   : > { %p853_p2 = pneg %p852_p8  ;;  %p859_p10 = por %p858_p3, %p857_p12 }
  0x42   : > { %p860_p11 = pnand %p859_p10, %p853_p2 }
  0x44   : > { %863 = shalt.err (!%p860_p11)
}
  0x45   : > { %s1083_s27 = smov 256   ;;  %s1084_s5 = smov 128  }
  0x46   : > { %s1085_s6 = smov 8   ;;  %s1549_s30 = scalar_lea.sflag [#allocation3], %s1222_s18 }
  0x47   : > { %716 = dma.hbm_to_vmem [thread:$0]  (!%p1243_p4), %s1239_s13, 512, %s1232_s7, %s1549_s30, %s1083_s27, %s1084_s5, %s1085_s6  }
  0x48   : > { %p687_p12 = scmp.ge.s32.totalorder %s1080_s25, 1  ;;  %p233_p2 = scmp.lt.s32.totalorder %s1080_s25, 5 }
  0x49   : > { %s1551_s29 = sshll.u32 %s1227_s10, 7  ;;  %s1552_s20 = sshll.u32 %s1222_s18, 5 }
  0x4a   : > { %p1280_p9 = pnand %p687_p12, %p233_p2  ;;  %s1289_s23 = scalar_lea.hbm %s1519_s1, %s1551_s29 }
  0x4b   : > { %s217_s12 = scalar_lea.vmem [#allocation5], %s1552_s20  ;;  %s214_s13 = scalar_lea.sflag [#allocation6], %s1222_s18 }
  0x4c   : > { %s225_s17 = sshll.u32 %s217_s12, 4  ;;  %s864_s7 = scalar_lea.hbm %s1289_s23, 512  ;;  %s1293_s17 = int_to_ptr.vmem [resolvable:$true] %s225_s17 }
  0x4d   : > { %p865_p13 = scmp.ne.s32.totalorder %s1289_s23, %s864_s7  ;;  %s869_s30 = scalar_lea.hbm %s1519_s1, 2048 }
  0x4e   : > { %p870_p5 = scmp.lt.u32.totalorder %s1289_s23, %s1519_s1  ;;  %p871_p8 = scmp.lt.u32.totalorder %s869_s30, %s864_s7 }
  0x4f   : > { %p867_p0 = pnand %p865_p13, %p836_p6  ;;  %p873_p10 = scmp.lt.u32.totalorder %s864_s7, %s1289_s23 }
  0x50   : > { %p872_p3 = por %p871_p8, %p870_p5 }
  0x51   : > { %p868_p1 = pneg %p867_p0 }
  0x52   : > { %p874_p11 = por %p873_p10, %p872_p3 }
  0x54   : > { %p875_p12 = pnand %p874_p11, %p868_p1 }
  0x56   : > { %878 = shalt.err (!%p875_p12)
}
  0x57   : > { %s879_s20 = scalar_lea.vmem %s1293_s17, 512  ;;  %s1086_s12 = smov [#allocation5]  }
  0x58   : > { %p880_p2 = scmp.ne.s32.totalorder %s1293_s17, %s879_s20  ;;  %s884_s10 = sshll.u32 %s1086_s12, 4  ;;  %s885_s10 = int_to_ptr.vmem [resolvable:$false] %s884_s10 }
  0x59   : > { %s886_s0 = scalar_lea.vmem %s885_s10, 1024  ;;  %p887_p7 = scmp.lt.s32.totalorder %s1293_s17, %s885_s10 }
  0x5a   : > { %p882_p13 = pnand %p880_p2, %p836_p6  ;;  %p888_p5 = scmp.lt.s32.totalorder %s886_s0, %s879_s20 }
  0x5c   : > { %p883_p0 = pneg %p882_p13  ;;  %p889_p8 = por %p888_p5, %p887_p7 }
  0x5e   : > { %p890_p3 = pnand %p889_p8, %p883_p0 }
  0x60   : > { %893 = shalt.err (!%p890_p3)
}
  0x61   : > { %719 = dma.hbm_to_vmem [thread:$0]  (!%p1243_p4), %s1289_s23, 512, %s1293_s17, %s214_s13, %s1083_s27, %s1084_s5, %s1085_s6  }
  0x62   : > { %237 = sbr.rel (%p1280_p9) target bundleno = 242 (0xf2), region = 28  ;;  %s239_s7 = sand.u32 (!%p1280_p9), 1, %s1056_s19  }
  0x63   : > { %s688_s30 = sshll.u32 (!%p1280_p9), %s239_s7, 5  ;;  %s240_s29 = scalar_lea.sflag (!%p1280_p9), [#allocation3], %s239_s7 }
  0x64   : > { %s243_s24 = scalar_lea.vmem (!%p1280_p9), [#allocation2], %s688_s30  ;;  %p1553_p7 = scmp.ne.s32.totalorder (!%p1280_p9), %s1542_s8, 0 }
  0x69   : > { %1023 = dma.done.wait (%p1553_p7), %s240_s29, 512  }
  0x6a   : > { %1025 = vsyncadd (%p1553_p7), %s240_s29, 4294966784  ;;  %s249_s9 = scalar_lea.sflag [#allocation6], %s239_s7  ;;  %s252_s18 = scalar_lea.vmem [#allocation5], %s688_s30 }
  0x6b   : > { %1027 = dma.done.wait (%p1553_p7), %s249_s9, 512  }
  0x6c   : > { %1029 = vsyncadd (%p1553_p7), %s249_s9, 4294966784  ;;  %s275_s17 = sand.u32 1, %s1044_s16   ;;  %p693_p4 = scmp.ne.s32.totalorder %s1064_s21, 0 }
  0x6d   : > { %s690_s23 = sshll.u32 %s275_s17, 2  ;;  %v1087_v0 = vmov (!%p693_p4), 0.0  }
  0x6e   : > { %s1338_s27 = scalar_lea.vmem [#allocation7], %s690_s23  ;;  %s1340_s5 = scalar_lea.vmem [#allocation8], %s690_s23 }
  0x6f   : > { %s1342_s6 = scalar_lea.vmem [#allocation10], %s690_s23  ;;  %295 = sbr.rel (%p693_p4) target bundleno = 118 (0x76), region = 40  ;;  %296 = vst [vmem:[%s1338_s27] sm:$0xf] (!%p693_p4), %v1087_v0  ;;  %297 = vst [vmem:[%s1340_s5] sm:$0xf] (!%p693_p4), %v1087_v0 }
  0x70   : > { %298 = vst [vmem:[%s1342_s6] sm:$0xf] (!%p693_p4), %v1087_v0 }
  0x76 PF: > { %v299_v1 = vld [vmem:[%s243_s24] sm:$0xff]  ;;  %v300_v2 = vld [vmem:[%s243_s24 + $0x8] sm:$0xff]  ;;  %v301_v3 = vld [vmem:[%s243_s24 + $0x10] sm:$0xff]  ;;  %vm379_vm0 = vcmask 1041409   ;;  %vm381_vm1 = vcmask 1042434   ;;  %vm383_vm2 = vcmask 1043459   ;;  %v330_v47 = vlaneseq }
  0x77   : > { %v302_v4 = vld [vmem:[%s243_s24 + $0x18] sm:$0xff]  ;;  %v307_v5 = vmax.f32 %v299_v1, %v300_v2  ;;  %v1348_v6 = vld [vmem:[%s252_s18] sm:$0xff]  ;;  %v1350_v8 = vld [vmem:[%s252_s18 + $0x8] sm:$0xff]  ;;  %s694_s8 = sshll.u32 %s1064_s21, 3  ;;  %s463_s21 = sand.u32 1, %s1170_s26  }
  0x78   : > { %v308_v7 = vmax.f32 %v301_v3, %v302_v4  ;;  %v1352_v9 = vld [vmem:[%s252_s18 + $0x10] sm:$0xff]  ;;  %v424_v10 = vrot.slane %v1348_v6, 4  ;;  %v1355_v11 = vld [vmem:[%s252_s18 + $0x18] sm:$0xff]  ;;  %v430_v12 = vrot.slane %v1350_v8, 4  ;;  %v331_v54 = vshrl.u32 %v330_v47, 7  ;;  %s698_s28 = sshll.u32 %s1068_s22, 6 }
  0x79   : > { %v436_v13 = vrot.slane %v1352_v9, 4  ;;  %v442_v16 = vrot.slane %v1355_v11, 4  ;;  %v423_v44 = vld [vmem:[%s1342_s6] sm:$0xf]  ;;  %v335_v56 = vstv %s694_s8  ;;  %v333_v60 = vand.u32 127, %v330_v47  ;;  %s495_s13 = sshll.u32 %s1340_s5, 4  ;;  %s1385_s10 = scalar_lea.hbm %s1521_s3, %s698_s28  ;;  %s1390_s13 = int_to_ptr.vmem [resolvable:$true] %s495_s13 }
  0x7a   : > { %v309_v14 = vmax.f32 %v307_v5, %v308_v7  ;;  %v425_v15 = vadd.f32 %v424_v10, %v1348_v6  ;;  %v431_v17 = vadd.f32 %v430_v12, %v1350_v8  ;;  %v336_v59 = vadd.s32 %v335_v56, %v331_v54  ;;  %v388_v56 = vld [vmem:[%s1340_s5] sm:$0xf]  ;;  %s508_s20 = sshll.u32 %s1342_s6, 4  ;;  %s482_s22 = sshll.u32 %s1338_s27, 4  ;;  %s1398_s20 = int_to_ptr.vmem [resolvable:$true] %s508_s20  ;;  %s1407_s22 = int_to_ptr.vmem [resolvable:$true] %s482_s22 }
  0x7b   : > { %v437_v18 = vadd.f32 %v436_v13, %v1352_v9  ;;  %v443_v29 = vadd.f32 %v442_v16, %v1355_v11  ;;  %s1396_s30 = scalar_lea.hbm %s1522_s4, %s698_s28  ;;  %s1405_s9 = scalar_lea.hbm %s1520_s2, %s698_s28 }
  0x7c   : > { %v310_v19 = vsub.f32 %v299_v1, %v309_v14  ;;  %v311_v20 = vsub.f32 %v300_v2, %v309_v14  ;;  %v312_v21 = vsub.f32 %v301_v3, %v309_v14  ;;  %v313_v22 = vsub.f32 %v302_v4, %v309_v14  ;;  %s1409_s18 = scalar_lea.sflag [#allocation9], %s463_s21  ;;  %s894_s23 = scalar_lea.vmem %s1390_s13, 64 }
  0x7d   : > { %v426_v23 = vrot.slane %v425_v15, 2  ;;  %v432_v24 = vrot.slane %v431_v17, 2  ;;  %v438_v25 = vrot.slane %v437_v18, 2  ;;  %v444_v34 = vrot.slane %v443_v29, 2  ;;  %p895_p6 = scmp.ne.s32.totalorder %s1390_s13, %s894_s23  ;;  %p1554_p9 = scmp.ne.s32.totalorder %s1543_s11, 0 }
  0x7e   : > { %v314_v26 = vmul.f32 1.442695, %v310_v19  ;;  %v316_v27 = vmul.f32 1.442695, %v311_v20  ;;  %v318_v28 = vmul.f32 1.442695, %v312_v21 }
  0x7f   : > { %v320_v30 = vmul.f32 1.442695, %v313_v22  ;;  %v427_v31 = vadd.f32 %v426_v23, %v425_v15  ;;  %v433_v32 = vadd.f32 %v432_v24, %v431_v17  ;;  %v439_v33 = vadd.f32 %v438_v25, %v437_v18  ;;  %p896_p1 = pnand %p895_p6, %p1554_p9 }
  0x80   : > { %824 = vpow2.f32 %v314_v26  ;;  %v445_v38 = vadd.f32 %v444_v34, %v443_v29  ;;  %v337_v61 = vmul.u32 128, %v336_v59 }
  0x81   : > { %826 = vpow2.f32 %v316_v27  ;;  %v428_v35 = vrot.slane %v427_v31, 1  ;;  %v434_v36 = vrot.slane %v433_v32, 1  ;;  %v440_v37 = vrot.slane %v439_v33, 1  ;;  %p897_p10 = pneg %p896_p1 }
  0x82   : > { %828 = vpow2.f32 %v318_v28  ;;  %v446_v42 = vrot.slane %v445_v38, 1  ;;  %v338_v62 = vadd.s32 %v337_v61, %v333_v60 }
  0x83   : > { %830 = vpow2.f32 %v320_v30  ;;  %v429_v39 = vadd.f32 %v428_v35, %v427_v31  ;;  %v435_v40 = vadd.f32 %v434_v36, %v433_v32  ;;  %v441_v41 = vadd.f32 %v440_v37, %v439_v33 }
  0x84   : > { %v447_v45 = vadd.f32 %v446_v42, %v445_v38  ;;  %vm339_vm3 = vcmp.lt.s32.totalorder %v338_v62, 1344 }
  0x85   : > { %v452_v43 = vsel %vm379_vm0, %v435_v40, %v429_v39 }
  0x86   : > { %v453_v46 = vsel %vm381_vm1, %v441_v41, %v452_v43 }
  0x87   : > { %v454_v48 = vsel %vm383_vm2, %v447_v45, %v453_v46 }
  0x88   : > { %v456_v49 = vadd.f32 %v454_v48, %v423_v44 }
  0x8a   : > { %v825_v50 = vpop.eup %824  ;;  %457 = vst [vmem:[%s1342_s6] sm:$0xf] %v456_v49  ;;  %s1088_s6 = smov [#allocation8]  }
  0x8b   : > { %v827_v51 = vpop.eup %826  ;;  %s898_s8 = sshll.u32 %s1088_s6, 4  ;;  %s899_s8 = int_to_ptr.vmem [resolvable:$false] %s898_s8 }
  0x8c   : > { %v829_v52 = vpop.eup %828  ;;  %v322_v53 = vadd.f32 %v827_v51, %v825_v50  ;;  %p901_p11 = scmp.lt.s32.totalorder %s1390_s13, %s899_s8 }
  0x8d   : > { %v831_v55 = vpop.eup %830 }
  0x8e   : > { %v323_v57 = vadd.f32 %v829_v52, %v322_v53 }
  0x90   : > { %v324_v58 = vadd.f32 %v831_v55, %v323_v57 }
  0x92   : > { %832 = vrcp.f32 %v324_v58 }
  0x9c   : > { %v833_v63 = vpop.eup %832 }
  0x9d   : > { %v326_v0 = vmul.f32 %v833_v63, %v825_v50  ;;  %v327_v1 = vmul.f32 %v833_v63, %v827_v51  ;;  %v328_v2 = vmul.f32 %v833_v63, %v829_v52  ;;  %v329_v3 = vmul.f32 %v833_v63, %v831_v55 }
  0x9f   : > { %v342_v4 = vsel %vm339_vm3, %v326_v0, 0.0  ;;  %v343_v5 = vsel %vm339_vm3, %v327_v1, 0.0  ;;  %v344_v7 = vsel %vm339_vm3, %v328_v2, 0.0  ;;  %v345_v10 = vsel %vm339_vm3, %v329_v3, 0.0  ;;  %v346_v1 = vld [vmem:[%s1338_s27] sm:$0xf] }
  0xa0   : > { %v389_v12 = vrot.slane %v342_v4, 4  ;;  %v395_v13 = vrot.slane %v343_v5, 4  ;;  %v401_v14 = vrot.slane %v344_v7, 4  ;;  %v407_v15 = vrot.slane %v345_v10, 4 }
  0xa1   : > { %v347_v16 = vmul.f32 %v342_v4, %v1348_v6  ;;  %v348_v17 = vmul.f32 %v343_v5, %v1350_v8  ;;  %v349_v18 = vmul.f32 %v344_v7, %v1352_v9  ;;  %v350_v19 = vmul.f32 %v345_v10, %v1355_v11 }
  0xa2   : > { %v390_v20 = vadd.f32 %v389_v12, %v342_v4  ;;  %v396_v21 = vadd.f32 %v395_v13, %v343_v5  ;;  %v402_v22 = vadd.f32 %v401_v14, %v344_v7  ;;  %v408_v23 = vadd.f32 %v407_v15, %v345_v10 }
  0xa3   : > { %v351_v24 = vrot.slane %v347_v16, 4  ;;  %v357_v25 = vrot.slane %v348_v17, 4  ;;  %v363_v26 = vrot.slane %v349_v18, 4  ;;  %v369_v27 = vrot.slane %v350_v19, 4 }
  0xa4   : > { %v391_v28 = vrot.slane %v390_v20, 2  ;;  %v397_v29 = vrot.slane %v396_v21, 2  ;;  %v403_v30 = vrot.slane %v402_v22, 2  ;;  %v409_v31 = vrot.slane %v408_v23, 2 }
  0xa5   : > { %v352_v32 = vadd.f32 %v351_v24, %v347_v16  ;;  %v358_v6 = vadd.f32 %v357_v25, %v348_v17  ;;  %v364_v33 = vadd.f32 %v363_v26, %v349_v18  ;;  %v370_v8 = vadd.f32 %v369_v27, %v350_v19 }
  0xa6   : > { %v392_v34 = vadd.f32 %v391_v28, %v390_v20  ;;  %v398_v9 = vadd.f32 %v397_v29, %v396_v21  ;;  %v404_v35 = vadd.f32 %v403_v30, %v402_v22  ;;  %v410_v11 = vadd.f32 %v409_v31, %v408_v23 }
  0xa7   : > { %v353_v36 = vrot.slane %v352_v32, 2  ;;  %v359_v37 = vrot.slane %v358_v6, 2  ;;  %v365_v38 = vrot.slane %v364_v33, 2  ;;  %v371_v39 = vrot.slane %v370_v8, 2 }
  0xa8   : > { %v393_v40 = vrot.slane %v392_v34, 1  ;;  %v399_v41 = vrot.slane %v398_v9, 1  ;;  %v405_v42 = vrot.slane %v404_v35, 1  ;;  %v411_v43 = vrot.slane %v410_v11, 1 }
  0xa9   : > { %v354_v44 = vadd.f32 %v353_v36, %v352_v32  ;;  %v360_v45 = vadd.f32 %v359_v37, %v358_v6  ;;  %v366_v46 = vadd.f32 %v365_v38, %v364_v33  ;;  %v372_v47 = vadd.f32 %v371_v39, %v370_v8 }
  0xaa   : > { %v394_v48 = vadd.f32 %v393_v40, %v392_v34  ;;  %v400_v49 = vadd.f32 %v399_v41, %v398_v9  ;;  %v406_v50 = vadd.f32 %v405_v42, %v404_v35  ;;  %v412_v51 = vadd.f32 %v411_v43, %v410_v11 }
  0xab   : > { %v355_v52 = vrot.slane %v354_v44, 1  ;;  %v361_v53 = vrot.slane %v360_v45, 1  ;;  %v367_v54 = vrot.slane %v366_v46, 1  ;;  %v373_v55 = vrot.slane %v372_v47, 1 }
  0xac   : > { %v417_v57 = vsel %vm379_vm0, %v400_v49, %v394_v48 }
  0xad   : > { %v418_v58 = vsel %vm381_vm1, %v406_v50, %v417_v57  ;;  %v356_v59 = vadd.f32 %v355_v52, %v354_v44  ;;  %v362_v60 = vadd.f32 %v361_v53, %v360_v45  ;;  %v368_v61 = vadd.f32 %v367_v54, %v366_v46 }
  0xae   : > { %v419_v62 = vsel %vm383_vm2, %v412_v51, %v418_v58  ;;  %v374_v63 = vadd.f32 %v373_v55, %v372_v47 }
  0xaf   : > { %v421_v0 = vadd.f32 %v419_v62, %v388_v56  ;;  %v380_v2 = vsel %vm379_vm0, %v362_v60, %v356_v59 }
  0xb0   : > { %v382_v3 = vsel %vm381_vm1, %v368_v61, %v380_v2 }
  0xb1   : > { %422 = vst [vmem:[%s1340_s5] sm:$0xf] %v421_v0  ;;  %v384_v4 = vsel %vm383_vm2, %v374_v63, %v382_v3  ;;  %s900_s5 = scalar_lea.vmem %s899_s8, 128 }
  0xb2   : > { %v386_v5 = vadd.f32 %v384_v4, %v346_v1  ;;  %p902_p12 = scmp.lt.s32.totalorder %s900_s5, %s894_s23 }
  0xb4   : > { %p903_p2 = por %p902_p12, %p901_p11 }
  0xb6   : > { %p904_p13 = pnand %p903_p2, %p897_p10 }
  0xb8   : > { %907 = shalt.err (!%p904_p13)
}
  0xb9   : > { %s908_s21 = scalar_lea.hbm %s1385_s10, 64  ;;  %s912_s12 = scalar_lea.hbm %s1521_s3, 128 }
  0xba   : > { %p909_p0 = scmp.ne.s32.totalorder %s1385_s10, %s908_s21  ;;  %p913_p3 = scmp.lt.u32.totalorder %s1385_s10, %s1521_s3 }
  0xbb   : > { %p914_p7 = scmp.lt.u32.totalorder %s912_s12, %s908_s21  ;;  %p916_p6 = scmp.lt.u32.totalorder %s908_s21, %s1385_s10 }
  0xbc   : > { %p910_p5 = pnand %p909_p0, %p1554_p9 }
  0xbd   : > { %p915_p4 = por %p914_p7, %p913_p3 }
  0xbe   : > { %p911_p8 = pneg %p910_p5 }
  0xbf   : > { %p917_p1 = por %p916_p6, %p915_p4 }
  0xc1   : > { %p918_p10 = pnand %p917_p1, %p911_p8 }
  0xc3   : > { %921 = shalt.err (!%p918_p10)
}
  0xc4   : > { %708 = dma.vmem_to_hbm [thread:$0]  (%p1554_p9), %s1390_s13, 64, %s1385_s10, %s1409_s18  }
  0xc5   : > { %s922_s29 = scalar_lea.vmem %s1398_s20, 64  ;;  %s1089_s24 = smov [#allocation10]  }
  0xc6   : > { %p923_p11 = scmp.ne.s32.totalorder %s1398_s20, %s922_s29  ;;  %s926_s23 = sshll.u32 %s1089_s24, 4  ;;  %s927_s23 = int_to_ptr.vmem [resolvable:$false] %s926_s23 }
  0xc7   : > { %s928_s6 = scalar_lea.vmem %s927_s23, 128  ;;  %p929_p13 = scmp.lt.s32.totalorder %s1398_s20, %s927_s23 }
  0xc8   : > { %p924_p12 = pnand %p923_p11, %p1554_p9  ;;  %p930_p0 = scmp.lt.s32.totalorder %s928_s6, %s922_s29 }
  0xca   : > { %p925_p2 = pneg %p924_p12  ;;  %p931_p5 = por %p930_p0, %p929_p13 }
  0xcc   : > { %p932_p8 = pnand %p931_p5, %p925_p2 }
  0xce   : > { %935 = shalt.err (!%p932_p8)
}
  0xcf   : > { %s936_s13 = scalar_lea.hbm %s1396_s30, 64  ;;  %s940_s5 = scalar_lea.hbm %s1522_s4, 128 }
  0xd0   : > { %p937_p3 = scmp.ne.s32.totalorder %s1396_s30, %s936_s13  ;;  %p941_p6 = scmp.lt.u32.totalorder %s1396_s30, %s1522_s4 }
  0xd1   : > { %p942_p1 = scmp.lt.u32.totalorder %s940_s5, %s936_s13  ;;  %p944_p11 = scmp.lt.u32.totalorder %s936_s13, %s1396_s30 }
  0xd2   : > { %p938_p7 = pnand %p937_p3, %p1554_p9 }
  0xd3   : > { %p943_p10 = por %p942_p1, %p941_p6 }
  0xd4   : > { %p939_p4 = pneg %p938_p7 }
  0xd5   : > { %p945_p12 = por %p944_p11, %p943_p10 }
  0xd7   : > { %p946_p2 = pnand %p945_p12, %p939_p4 }
  0xd9   : > { %949 = shalt.err (!%p946_p2)
}
  0xda   : > { %709 = dma.vmem_to_hbm [thread:$0]  (%p1554_p9), %s1398_s20, 64, %s1396_s30, %s1409_s18   ;;  %387 = vst [vmem:[%s1338_s27] sm:$0xf] %v386_v5 }
  0xdb   : > { %s459_s26 = scalar_lea.sflag [#allocation4], %s275_s17  ;;  %s950_s12 = scalar_lea.vmem %s1407_s22, 64 }
  0xdc   : > { %p951_p13 = scmp.ne.s32.totalorder %s1407_s22, %s950_s12  ;;  %s1090_s0 = smov [#allocation7]  }
  0xdd   : > { %s954_s7 = sshll.u32 %s1090_s0, 4  ;;  %s955_s7 = int_to_ptr.vmem [resolvable:$false] %s954_s7 }
  0xde   : > { %p952_p0 = pnand %p951_p13, %p1554_p9  ;;  %s956_s29 = scalar_lea.vmem %s955_s7, 128 }
  0xdf   : > { %p957_p8 = scmp.lt.s32.totalorder %s1407_s22, %s955_s7  ;;  %p958_p3 = scmp.lt.s32.totalorder %s956_s29, %s950_s12 }
  0xe0   : > { %p953_p5 = pneg %p952_p0 }
  0xe1   : > { %p959_p7 = por %p958_p3, %p957_p8 }
  0xe3   : > { %p960_p4 = pnand %p959_p7, %p953_p5 }
  0xe5   : > { %963 = shalt.err (!%p960_p4)
}
  0xe6   : > { %s964_s17 = scalar_lea.hbm %s1405_s9, 64  ;;  %s968_s30 = scalar_lea.hbm %s1520_s2, 128 }
  0xe7   : > { %p965_p6 = scmp.ne.s32.totalorder %s1405_s9, %s964_s17  ;;  %p969_p11 = scmp.lt.u32.totalorder %s1405_s9, %s1520_s2 }
  0xe8   : > { %p970_p12 = scmp.lt.u32.totalorder %s968_s30, %s964_s17  ;;  %p972_p13 = scmp.lt.u32.totalorder %s964_s17, %s1405_s9 }
  0xe9   : > { %p966_p1 = pnand %p965_p6, %p1554_p9 }
  0xea   : > { %p971_p2 = por %p970_p12, %p969_p11 }
  0xeb   : > { %p967_p10 = pneg %p966_p1 }
  0xec   : > { %p973_p0 = por %p972_p13, %p971_p2 }
  0xee   : > { %p974_p5 = pnand %p973_p0, %p967_p10 }
  0xf0   : > { %977 = shalt.err (!%p974_p5)
}
  0xf1   : > { %707 = dma.vmem_to_hbm [thread:$0]  (%p1554_p9), %s1407_s22, 64, %s1405_s9, %s459_s26  }
  0xf2 PF: > { %p731_p8 = scmp.ge.s32.totalorder %s1080_s25, 2  ;;  %s520_s23 = sand.u32 1, %s1040_s15  }
  0xf3   : > { %p1555_p3 = scmp.ne.s32.totalorder %s1546_s14, 0  ;;  %s521_s6 = scalar_lea.sflag [#allocation4], %s520_s23 }
  0xf5   : > { %p721_p7 = pnand %p731_p8, %p1555_p3 }
  0xf7   : > { %1031 = dma.done.wait (!%p721_p7), %s521_s6, 64  }
  0xf8   : > { %1033 = vsyncadd (!%p721_p7), %s521_s6, 4294967232  ;;  %s1556_s13 = sadd.s32 4294967294, %s1080_s25  }
  0xf9   : > { %s529_s10 = sand.u32 1, %s1556_s13  }
  0xfa   : > { %s530_s8 = scalar_lea.sflag [#allocation9], %s529_s10 }
  0xfb   : > { %1035 = dma.done.wait (!%p721_p7), %s530_s8, 128  }
  0xfc   : > { %1037 = vsyncadd (!%p721_p7), %s530_s8, 4294967168  ;;  %s27_s25 = sadd.s32 1, %s1080_s25   ;;  %s1557_s11 = sld [smem:[#allocation15_spill]] }
  0xfd   : > { %p24_p9 = scmp.ge.s32.totalorder %s27_s25, 6   ;;  %s1558_s17 = sld [smem:[#allocation21_spill]] }
  0xfe   : > { %s1559_s22 = sld [smem:[#allocation16_spill]]  ;;  %s1560_s20 = sld [smem:[#allocation22_spill]] }
  0xff   : > { %s1561_s21 = sld [smem:[#allocation17_spill]]  ;;  %s1562_s14 = sld [smem:[#allocation18_spill]] }
 0x100   : > { %s1563_s23 = sld [smem:[#allocation19_spill]]  ;;  %s1564_s24 = sld [smem:[#allocation20_spill]] }
 0x101   : > { %s1565_s15 = smov %s1044_s16  ;;  %s1567_s18 = smov %s1056_s19 }
 0x102   : > { %s1566_s16 = smov %s1557_s11  ;;  %26 = sbr.rel (!%p24_p9) target bundleno = 15 (0xf), region = 122 }
 0x104   : > { %s1568_s19 = smov %s1559_s22 }
 0x105   : > { %s1569_s22 = smov %s1562_s14 }
 0x109   :  { %544 = vsyncpa [#allocation3], 1 }
 0x10a   :  { %546 = vsyncpa [#allocation3 + $0x1], 1 }
 0x10b   :  { %547 = vsyncpa [#allocation6], 1 }
 0x10c   :  { %549 = vsyncpa [#allocation6 + $0x1], 1 }
 0x10d   :  { %550 = vsyncpa [#allocation4], 1 }
 0x10e   :  { %552 = vsyncpa [#allocation4 + $0x1], 1 }
 0x10f   :  { %553 = vsyncpa [#allocation9], 1 }
 0x110   :  { %555 = vsyncpa [#allocation9 + $0x1], 1 }

</bundles_post_ra>
